<compile_context>
chip_gen: v7x
topology: tpu7x:2x2x1
jax: 0.10.0
libtpu: 0.0.40
codegen_flags: <defaults>
</compile_context>

<pallas_src>
import jax
import jax.numpy as jnp
from jax import lax
from jax.experimental import pallas as pl
from jax.experimental.pallas import tpu as pltpu

_MiB = 1024 * 1024


def scale_norm_kernel(scale_ref, x_ref, o_ref):
    # scale_ref: SMEM (1,) f32 learned scalar parameter (scalar prefetch)
    # x_ref / o_ref: VMEM tile (row_tile, hidden)
    x = x_ref[...].astype(jnp.float32)
    sumsq = jnp.sum(x * x, axis=-1, keepdims=True)        # per-row ||x||^2
    # rsqrt lowers to the otherwise-idle EUP slot; removes a VALU divide.
    inv_norm = scale_ref[0] * lax.rsqrt(sumsq)             # scale / ||x||_2
    o_ref[...] = (x * inv_norm).astype(o_ref.dtype)
    # Matches the PyTorch module exactly — no eps, so an all-zero row yields
    # inf/nan just like `scale / torch.norm(x)` would.


def _tpu_vmem_and_cores():
    """Best-effort hardware query: (per-core VMEM bytes, has 2 TensorCores)."""
    vmem_cap = 64 * _MiB          # conservative default (v7x per-TC VMEM)
    two_cores = False
    try:
        info = pltpu.get_tpu_info()
        vmem_cap = int(getattr(info, "vmem_capacity_bytes", vmem_cap)) or vmem_cap
    except Exception:
        pass
    try:
        kind = jax.devices()[0].device_kind.lower()
        two_cores = "v7" in kind   # v7x: 2 TensorCores per chip
    except Exception:
        pass
    return vmem_cap, two_cores


def _choose_row_tile(rows, hidden, dtype_bytes, vmem_budget, two_cores):
    """Byte-targeted row tile, aligned to the dtype's sublane packing."""
    # Sublane packing: 8 rows for 32-bit, 16 for 16-bit, 32 for 8-bit dtypes.
    pack = 8 * max(1, 4 // max(1, dtype_bytes))

    per_row_in = hidden * dtype_bytes
    # VMEM per row across the pipeline: double-buffered input + output tiles,
    # plus an f32 intermediate for sub-32-bit inputs (the upcast copy does not
    # stay in vregs at these tile sizes).
    per_row_vmem = 4 * per_row_in + (4 * hidden if dtype_bytes < 4 else 0)

    # Target ~8 MiB of input per grid step (mem-bound: amortise step overhead).
    row_tile = max(pack, (8 * _MiB) // per_row_in)
    # ...but the whole pipeline must fit the VMEM budget.
    row_tile = min(row_tile, max(pack, vmem_budget // per_row_vmem))

    rows_padded = -(-rows // pack) * pack
    row_tile = min(row_tile, rows_padded)

    if two_cores and rows_padded >= 2 * pack:
        # v7x only: keep >=2 grid steps so both TensorCores get work, but never
        # shrink an input tile below ~1 MiB just for that.
        half = -(-pl.cdiv(rows, 2) // pack) * pack
        if half * per_row_in >= 1 * _MiB:
            row_tile = min(row_tile, half)

    row_tile = max(pack, (row_tile // pack) * pack)
    return row_tile


def scale_norm(x, scale, *, donate_x=False):
    """ScaleNorm forward.  x: (..., hidden); scale: shape (1,) parameter."""
    orig_shape = x.shape
    hidden = orig_shape[-1]
    rows = 1
    for d in orig_shape[:-1]:
        rows *= d
    x2d = x.reshape(rows, hidden)

    dtype_bytes = jnp.dtype(x.dtype).itemsize
    vmem_cap, two_cores = _tpu_vmem_and_cores()

    # Generation-aware budgets: ~half of per-core VMEM for pipeline buffers
    # (32 MiB on v7x, 64 MiB on v5e/v6e), limit with a little headroom on top.
    vmem_budget = min(vmem_cap // 2, 64 * _MiB)
    vmem_limit = min(vmem_budget + 8 * _MiB, (vmem_cap * 3) // 4)

    row_tile = _choose_row_tile(rows, hidden, dtype_bytes, vmem_budget, two_cores)
    grid = (pl.cdiv(rows, row_tile),)
    # Tail tile (row_tile not dividing rows) is handled by Pallas block
    # padding: OOB reads are padded, OOB writes dropped.  Each row's norm is
    # strictly per-row, so pad-row garbage never contaminates valid rows.

    kwargs = {}
    if donate_x:
        # x2d (arg index 1, after the prefetched scale) aliases the output.
        kwargs["input_output_aliases"] = {1: 0}

    out = pl.pallas_call(
        scale_norm_kernel,
        out_shape=jax.ShapeDtypeStruct((rows, hidden), x.dtype),
        grid_spec=pltpu.PrefetchScalarGridSpec(
            num_scalar_prefetch=1,                      # scale -> SMEM
            grid=grid,
            in_specs=[
                pl.BlockSpec((row_tile, hidden), lambda i, scale_ref: (i, 0)),
            ],
            out_specs=pl.BlockSpec((row_tile, hidden), lambda i, scale_ref: (i, 0)),
        ),
        compiler_params=pltpu.CompilerParams(
            dimension_semantics=("parallel",),
            vmem_limit_bytes=int(vmem_limit),
        ),
        **kwargs,
    )(scale.reshape(1).astype(jnp.float32), x2d)

    return out.reshape(orig_shape)


if __name__ == "__main__":
    key = jax.random.PRNGKey(0)
    # small transformer-activation-like shape; hidden=128 keeps stores lane-dense
    batch, seq, hidden = 2, 8, 128
    x = jax.random.normal(key, (batch, seq, hidden), dtype=jnp.float32)

    # deterministic parameter init, matching nn.Parameter(torch.ones(1))
    scale = jnp.ones((1,), dtype=jnp.float32)

    y = jax.block_until_ready(scale_norm(x, scale))

    # reference check in plain JAX
    ref = x * (scale / jnp.linalg.norm(x, axis=-1, keepdims=True))
    assert y.shape == x.shape
    assert jnp.allclose(y, ref, atol=1e-5, rtol=1e-5), "mismatch vs reference"

    print("KERNEL_OK")
</pallas_src>

<mosaic_0001>
module attributes {stable_mosaic.version = 11 : i64} {
  func.func @scale_norm_kernel(%arg0: i32, %arg1: memref<1xf32, #tpu.memory_space<smem>>, %arg2: memref<16x128xf32, #tpu.memory_space<vmem>>, %arg3: memref<16x128xf32, #tpu.memory_space<vmem>>) attributes {dimension_semantics = [#tpu.dimension_semantics<parallel>], iteration_bounds = array<i64: 1>, scalar_prefetch = 1 : i64, scratch_operands = 0 : i64, tpu.core_type = #tpu.core_type<tc>, window_params = [{transform_indices = @transform_0, window_bounds = array<i64: 16, 128>}, {transform_indices = @transform_1, window_bounds = array<i64: 16, 128>}]} {
    %c0 = arith.constant 0 : index
    %c0_0 = arith.constant 0 : index
    %0 = vector.load %arg2[%c0, %c0_0] : memref<16x128xf32, #tpu.memory_space<vmem>>, vector<16x128xf32>
    %1 = arith.mulf %0, %0 : vector<16x128xf32>
    %cst = arith.constant dense<0.000000e+00> : vector<16xf32>
    %2 = vector.multi_reduction <add>, %1, %cst [1] : vector<16x128xf32> to vector<16xf32>
    %3 = vector.shape_cast %2 : vector<16xf32> to vector<16x1xf32>
    %c0_1 = arith.constant 0 : index
    %4 = memref.load %arg1[%c0_1] : memref<1xf32, #tpu.memory_space<smem>>
    %5 = math.rsqrt %3 : vector<16x1xf32>
    %6 = vector.broadcast %4 : f32 to vector<16x1xf32>
    %7 = arith.mulf %6, %5 : vector<16x1xf32>
    %8 = vector.broadcast %7 : vector<16x1xf32> to vector<16x128xf32>
    %9 = arith.mulf %0, %8 : vector<16x128xf32>
    %c0_2 = arith.constant 0 : index
    %c0_3 = arith.constant 0 : index
    %10 = vector.load %arg3[%c0_2, %c0_3] : memref<16x128xf32, #tpu.memory_space<vmem>>, vector<16x128xf32>
    tpu.vector_store %arg3[%c0_2, %c0_3], %9 {strides = array<i32>} : memref<16x128xf32, #tpu.memory_space<vmem>>, vector<16x128xf32>,
    return
  }
  func.func @transform_0(%arg0: i32, %arg1: memref<1xf32, #tpu.memory_space<smem>>) -> (i32, i32) {
    %c0_i32 = arith.constant 0 : i32
    %c0_i32_0 = arith.constant 0 : i32
    return %arg0, %c0_i32 : i32, i32
  }
  func.func @transform_1(%arg0: i32, %arg1: memref<1xf32, #tpu.memory_space<smem>>) -> (i32, i32) {
    %c0_i32 = arith.constant 0 : i32
    %c0_i32_0 = arith.constant 0 : i32
    return %arg0, %c0_i32 : i32, i32
  }
}

</mosaic_0001>

<bundles_post_ra>
// kernel: tpu_custom_call.1
= control target key start
LH: loop header
LB: loop body
LE: loop exit
PB: predicated region body
PF: predicated region fallthrough
CT: control target
= control target key end

     0   :  { %8 = vsyncpa [#allocation5], 0  ;;  %s168_s0 = inlined_call_operand.<no memory space> [shape: f32[1], index: 0, kind: input, shape index: {}]   ;;  %s169_s1 = inlined_call_operand.hbm [shape: f32[16,128], index: 1, kind: input, shape index: {}]   ;;  %s170_s2 = inlined_call_operand.hbm [shape: f32[16,128], index: 2, kind: output, shape index: {}]  }
   0x1   :  { %9 = vsyncpa [#allocation6], 0  ;;  %s116_s9 = smov [#allocation4]   ;;  %s68_s13 = scalar_lea.hbm %s169_s1, 256 }
   0x2   :  { %s15_s10 = sshll.u32 %s116_s9, 4  ;;  %p69_p0 = scmp.ne.s32.totalorder %s169_s1, %s68_s13  ;;  %s16_s10 = int_to_ptr.vmem [resolvable:$true] %s15_s10 }
   0x3   :  { %p72_p1 = scmp.lt.u32.totalorder %s68_s13, %s169_s1 }
   0x5   :  { %p74_p2 = pnand %p72_p1, %p69_p0 }
   0x7   :  { %77 = shalt.err (!%p74_p2)
}
   0x8   :  { %s78_s18 = scalar_lea.vmem %s16_s10, 256  ;;  %p83_p4 = scmp.lt.s32.totalorder %s16_s10, %s16_s10 }
   0x9   :  { %p79_p3 = scmp.ne.s32.totalorder %s16_s10, %s78_s18  ;;  %p84_p5 = scmp.lt.s32.totalorder %s78_s18, %s78_s18 }
   0xb   :  { %p85_p6 = por %p84_p5, %p83_p4 }
   0xd   :  { %p86_p7 = pnand %p85_p6, %p79_p3 }
   0xf   :  { %89 = shalt.err (!%p86_p7)
}
  0x10   :  { %s117_s19 = smov 128   ;;  %s118_s20 = smov 8  }
  0x11   :  { %21 = dma.hbm_to_vmem [thread:$0]  %s169_s1, 256, %s16_s10, [#allocation5], %s117_s19, %s117_s19, %s118_s20  }
  0x12   :  { %112 = dma.done.wait [#allocation5], 256  }
  0x13   :  { %113 = vsyncadd [#allocation5], 4294967040  ;;  %v25_v0 = vld [vmem:[#allocation4] sm:$0xff]  ;;  %v26_v1 = vld [vmem:[#allocation4 + $0x8] sm:$0xff]  ;;  %v36_v6 = vstv %s168_s0  ;;  %s119_s1 = smov [#allocation7]  }
  0x14   :  { %v27_v2 = vmul.f32 %v25_v0, %v25_v0  ;;  %v28_v3 = vmul.f32 %v26_v1, %v26_v1  ;;  %s48_s25 = sshll.u32 %s119_s1, 4  ;;  %s49_s25 = int_to_ptr.vmem [resolvable:$true] %s48_s25 }
  0x15   :  { %s90_s26 = scalar_lea.vmem %s49_s25, 256  ;;  %p95_p9 = scmp.lt.s32.totalorder %s49_s25, %s49_s25 }
  0x16   :  { %29 = vadd.xlane.f32.xlu0 %v27_v2  ;;  %p91_p8 = scmp.ne.s32.totalorder %s49_s25, %s90_s26  ;;  %p96_p10 = scmp.lt.s32.totalorder %s90_s26, %s90_s26 }
  0x18   :  { %p97_p11 = por %p96_p10, %p95_p9 }
  0x1a   :  { %31 = vadd.xlane.f32.xlu0 %v28_v3  ;;  %p98_p12 = pnand %p97_p11, %p91_p8 }
  0xa3   :  { %v30_v4 = vpop.xlane.xlu0 %29 }
  0xa4   :  { %64 = vrsqrt.f32 %v30_v4 }
  0xa7   :  { %v32_v5 = vpop.xlane.xlu0 %31 }
  0xa8   :  { %66 = vrsqrt.f32 %v32_v5 }
  0xae   :  { %v65_v7 = vpop.eup %64 }
  0xaf   :  { %v37_v8 = vmul.f32 %v65_v7, %v36_v6 }
  0xb1   :  { %v39_v9 = vmul.f32 %v37_v8, %v25_v0 }
  0xb2   :  { %v67_v10 = vpop.eup %66 }
  0xb3   :  { %v38_v11 = vmul.f32 %v67_v10, %v36_v6  ;;  %41 = vst [vmem:[#allocation7] sm:$0xff] %v39_v9 }
  0xb5   :  { %v40_v12 = vmul.f32 %v38_v11, %v26_v1 }
  0xb7   :  { %42 = vst [vmem:[#allocation7 + $0x8] sm:$0xff] %v40_v12 }
  0xb8   :  { %101 = shalt.err (!%p98_p12)
}
  0xb9   :  { %s102_s28 = scalar_lea.hbm %s170_s2, 256 }
  0xba   :  { %p103_p13 = scmp.ne.s32.totalorder %s170_s2, %s102_s28  ;;  %p106_p0 = scmp.lt.u32.totalorder %s102_s28, %s170_s2 }
  0xbc   :  { %p108_p1 = pnand %p106_p0, %p103_p13 }
  0xbe   :  { %111 = shalt.err (!%p108_p1)
}
  0xbf   :  { %54 = dma.vmem_to_hbm [thread:$0]  %s49_s25, 256, %s170_s2, [#allocation6], %s117_s19, %s117_s19, %s118_s20  }
  0xc0   :  { %114 = dma.done.wait [#allocation6], 256  }
  0xc1   :  { %115 = vsyncadd [#allocation6], 4294967040 }
  0xc2   :  { %58 = vsyncpa [#allocation5], 1 }
  0xc3   :  { %59 = vsyncpa [#allocation6], 1 }

</bundles_post_ra>
